<compile_context>
chip_gen: v6e
topology: v6e:2x2x1
jax: 0.10.0
libtpu: 0.0.40
codegen_flags: <defaults>
</compile_context>

<pallas_src>
import jax
import jax.numpy as jnp
from jax.experimental import pallas as pl
from jax.experimental.pallas import tpu as pltpu

BN_EPS = 1e-5
LANE = 128
NEG_PAD = -1e30  # padding value for b2 lanes beyond the real output dim


def _round_up(n, m):
    return ((n + m - 1) // m) * m


def _pad_to(a, shape, value=0.0):
    pads = [(0, t - s) for s, t in zip(a.shape, shape)]
    if all(p == (0, 0) for p in pads):
        return a
    return jnp.pad(a, pads, constant_values=value)


def device_mlp_kernel(x_ref, w1_ref, b1_ref, gamma_ref, beta_ref,
                      w2_ref, b2_ref, o_ref):
    # Hoist all parameter loads / broadcasts once.
    x = x_ref[...]                # (B, Ip) f32
    w1 = w1_ref[...]              # (Ip, Hp)
    b1 = b1_ref[...]              # (1, Hp)
    gamma = gamma_ref[...]        # (1, Hp)
    beta = beta_ref[...]          # (1, Hp)
    w2 = w2_ref[...]              # (Hp, Op)
    b2 = b2_ref[...]              # (1, Op)  (padded lanes = NEG_PAD)

    # fc1: bf16 MXU inputs, f32 accumulation.
    h = jnp.dot(x.astype(jnp.bfloat16), w1.astype(jnp.bfloat16),
                preferred_element_type=jnp.float32) + b1        # (B, Hp) f32

    # BatchNorm1d with batch statistics (track_running_stats=False), biased
    # variance. Single-pass: sum and sum-of-squares in one sweep.
    inv_b = 1.0 / h.shape[0]
    s = jnp.sum(h, axis=0, keepdims=True)                       # (1, Hp)
    ss = jnp.sum(h * h, axis=0, keepdims=True)                  # (1, Hp)
    mean = s * inv_b
    var = ss * inv_b - mean * mean
    h = (h - mean) * jax.lax.rsqrt(var + BN_EPS)
    h = h * gamma + beta

    # ReLU
    h = jnp.maximum(h, 0.0)

    # fc2: bf16 MXU inputs, f32 accumulation. Padded logits get b2 = -1e30.
    logits = jnp.dot(h.astype(jnp.bfloat16), w2.astype(jnp.bfloat16),
                     preferred_element_type=jnp.float32) + b2   # (B, Op) f32

    # log_softmax over the lane dim; padded lanes underflow to exp(.) == 0.
    m = jnp.max(logits, axis=1, keepdims=True)
    shifted = logits - m
    lse = jnp.log(jnp.sum(jnp.exp(shifted), axis=1, keepdims=True))
    o_ref[...] = shifted - lse


def device_mlp_forward(x, w1, b1, gamma, beta, w2, b2):
    B, I = x.shape
    H = w1.shape[1]
    O = w2.shape[1]
    Ip, Hp, Op = _round_up(I, LANE), _round_up(H, LANE), _round_up(O, LANE)

    # Lane-pad everything (see padding contract at top of file).
    xp = _pad_to(x, (B, Ip))
    w1p = _pad_to(w1, (Ip, Hp))
    b1p = _pad_to(b1, (1, Hp))
    gammap = _pad_to(gamma, (1, Hp), 1.0)
    betap = _pad_to(beta, (1, Hp))
    w2p = _pad_to(w2, (Hp, Op))
    b2p = _pad_to(b2, (1, Op), NEG_PAD)

    flops = 2 * B * (I * H + H * O)
    transcendentals = B * (O + 1) + H            # exp per logit, log per row, rsqrt per hidden col
    bytes_accessed = 4 * (xp.size + w1p.size + b1p.size + gammap.size
                          + betap.size + w2p.size + b2p.size + B * Op)

    out = pl.pallas_call(
        device_mlp_kernel,
        out_shape=jax.ShapeDtypeStruct((B, Op), jnp.float32),
        in_specs=[pl.BlockSpec(memory_space=pltpu.MemorySpace.VMEM)] * 7,
        out_specs=pl.BlockSpec(memory_space=pltpu.MemorySpace.VMEM),
        cost_estimate=pl.CostEstimate(flops=flops,
                                      transcendentals=transcendentals,
                                      bytes_accessed=bytes_accessed),
    )(xp, w1p, b1p, gammap, betap, w2p, b2p)
    return out[:, :O]


def init_params(key, input_size, hidden_size, output_size):
    k1, k2, k3, k4 = jax.random.split(key, 4)
    # PyTorch Linear default init: U(-1/sqrt(fan_in), 1/sqrt(fan_in)).
    lim1 = 1.0 / (input_size ** 0.5)
    lim2 = 1.0 / (hidden_size ** 0.5)
    w1 = jax.random.uniform(k1, (input_size, hidden_size), jnp.float32, -lim1, lim1)
    b1 = jax.random.uniform(k2, (1, hidden_size), jnp.float32, -lim1, lim1)
    w2 = jax.random.uniform(k3, (hidden_size, output_size), jnp.float32, -lim2, lim2)
    b2 = jax.random.uniform(k4, (1, output_size), jnp.float32, -lim2, lim2)
    # BatchNorm1d affine defaults: weight=1, bias=0.
    gamma = jnp.ones((1, hidden_size), jnp.float32)
    beta = jnp.zeros((1, hidden_size), jnp.float32)
    return w1, b1, gamma, beta, w2, b2


def reference_forward_bf16(x, w1, b1, gamma, beta, w2, b2):
    # Mirrors the kernel's bf16-input / f32-accumulate matmuls.
    h = jnp.dot(x.astype(jnp.bfloat16), w1.astype(jnp.bfloat16),
                preferred_element_type=jnp.float32) + b1
    mean = jnp.mean(h, axis=0, keepdims=True)
    var = jnp.mean((h - mean) ** 2, axis=0, keepdims=True)
    h = (h - mean) / jnp.sqrt(var + BN_EPS)
    h = h * gamma + beta
    h = jnp.maximum(h, 0.0)
    logits = jnp.dot(h.astype(jnp.bfloat16), w2.astype(jnp.bfloat16),
                     preferred_element_type=jnp.float32) + b2
    return jax.nn.log_softmax(logits, axis=1)


def reference_forward_f32(x, w1, b1, gamma, beta, w2, b2):
    h = x @ w1 + b1
    mean = jnp.mean(h, axis=0, keepdims=True)
    var = jnp.mean((h - mean) ** 2, axis=0, keepdims=True)
    h = (h - mean) / jnp.sqrt(var + BN_EPS)
    h = h * gamma + beta
    h = jnp.maximum(h, 0.0)
    logits = h @ w2 + b2
    return jax.nn.log_softmax(logits, axis=1)


if __name__ == "__main__":
    input_size, hidden_size, output_size = 32, 64, 16
    batch = 8

    key = jax.random.PRNGKey(0)
    kx, kp = jax.random.split(key)
    x = jax.random.normal(kx, (batch, input_size), jnp.float32)
    params = init_params(kp, input_size, hidden_size, output_size)

    out = jax.block_until_ready(device_mlp_forward(x, *params))
    assert out.shape == (batch, output_size)
    assert bool(jnp.all(jnp.isfinite(out)))

    # Tight check vs. a reference using the same bf16 MXU-input precision.
    ref_bf16 = reference_forward_bf16(x, *params)
    assert jnp.allclose(out, ref_bf16, atol=1e-4, rtol=1e-4)

    # Loose check vs. the full-f32 PyTorch-semantics reference.
    ref_f32 = reference_forward_f32(x, *params)
    assert jnp.allclose(out, ref_f32, atol=2e-2, rtol=2e-2)

    print("KERNEL_OK")
</pallas_src>

<mosaic_0001>
module attributes {stable_mosaic.version = 11 : i64} {
  func.func @device_mlp_kernel(%arg0: memref<8x128xf32, #tpu.memory_space<vmem>>, %arg1: memref<128x128xf32, #tpu.memory_space<vmem>>, %arg2: memref<1x128xf32, #tpu.memory_space<vmem>>, %arg3: memref<1x128xf32, #tpu.memory_space<vmem>>, %arg4: memref<1x128xf32, #tpu.memory_space<vmem>>, %arg5: memref<128x128xf32, #tpu.memory_space<vmem>>, %arg6: memref<1x128xf32, #tpu.memory_space<vmem>>, %arg7: memref<8x128xf32, #tpu.memory_space<vmem>>) attributes {dimension_semantics = [], scalar_prefetch = 0 : i64, scratch_operands = 0 : i64, tpu.core_type = #tpu.core_type<tc>} {
    %c0 = arith.constant 0 : index
    %c0_0 = arith.constant 0 : index
    %0 = vector.load %arg0[%c0, %c0_0] : memref<8x128xf32, #tpu.memory_space<vmem>>, vector<8x128xf32>
    %c0_1 = arith.constant 0 : index
    %c0_2 = arith.constant 0 : index
    %1 = vector.load %arg1[%c0_1, %c0_2] : memref<128x128xf32, #tpu.memory_space<vmem>>, vector<128x128xf32>
    %c0_3 = arith.constant 0 : index
    %c0_4 = arith.constant 0 : index
    %2 = vector.load %arg2[%c0_3, %c0_4] : memref<1x128xf32, #tpu.memory_space<vmem>>, vector<1x128xf32>
    %c0_5 = arith.constant 0 : index
    %c0_6 = arith.constant 0 : index
    %3 = vector.load %arg3[%c0_5, %c0_6] : memref<1x128xf32, #tpu.memory_space<vmem>>, vector<1x128xf32>
    %c0_7 = arith.constant 0 : index
    %c0_8 = arith.constant 0 : index
    %4 = vector.load %arg4[%c0_7, %c0_8] : memref<1x128xf32, #tpu.memory_space<vmem>>, vector<1x128xf32>
    %c0_9 = arith.constant 0 : index
    %c0_10 = arith.constant 0 : index
    %5 = vector.load %arg5[%c0_9, %c0_10] : memref<128x128xf32, #tpu.memory_space<vmem>>, vector<128x128xf32>
    %c0_11 = arith.constant 0 : index
    %c0_12 = arith.constant 0 : index
    %6 = vector.load %arg6[%c0_11, %c0_12] : memref<1x128xf32, #tpu.memory_space<vmem>>, vector<1x128xf32>
    %7 = arith.truncf %0 : vector<8x128xf32> to vector<8x128xbf16>
    %8 = arith.truncf %1 : vector<128x128xf32> to vector<128x128xbf16>
    %cst = arith.constant dense<0.000000e+00> : vector<8x128xf32>
    %9 = tpu.matmul %7, %8, %cst {dimension_numbers = #tpu.dot_dimension_numbers<[1], [0], [0], [1], [0, 0, 1, 1], [], []>} : vector<8x128xbf16>, vector<128x128xbf16>, vector<8x128xf32> -> vector<8x128xf32>
    %10 = vector.broadcast %2 : vector<1x128xf32> to vector<8x128xf32>
    %11 = arith.addf %9, %10 : vector<8x128xf32>
    %cst_13 = arith.constant dense<0.000000e+00> : vector<128xf32>
    %12 = vector.multi_reduction <add>, %11, %cst_13 [0] : vector<8x128xf32> to vector<128xf32>
    %13 = vector.shape_cast %12 : vector<128xf32> to vector<1x128xf32>
    %14 = arith.mulf %11, %11 : vector<8x128xf32>
    %cst_14 = arith.constant dense<0.000000e+00> : vector<128xf32>
    %15 = vector.multi_reduction <add>, %14, %cst_14 [0] : vector<8x128xf32> to vector<128xf32>
    %16 = vector.shape_cast %15 : vector<128xf32> to vector<1x128xf32>
    %cst_15 = arith.constant 1.250000e-01 : f32
    %17 = vector.broadcast %cst_15 : f32 to vector<1x128xf32>
    %18 = arith.mulf %13, %17 : vector<1x128xf32>
    %cst_16 = arith.constant 1.250000e-01 : f32
    %19 = vector.broadcast %cst_16 : f32 to vector<1x128xf32>
    %20 = arith.mulf %16, %19 : vector<1x128xf32>
    %21 = arith.mulf %18, %18 : vector<1x128xf32>
    %22 = arith.subf %20, %21 : vector<1x128xf32>
    %23 = vector.broadcast %18 : vector<1x128xf32> to vector<8x128xf32>
    %24 = arith.subf %11, %23 : vector<8x128xf32>
    %cst_17 = arith.constant 9.99999974E-6 : f32
    %25 = vector.broadcast %cst_17 : f32 to vector<1x128xf32>
    %26 = arith.addf %22, %25 : vector<1x128xf32>
    %27 = math.rsqrt %26 : vector<1x128xf32>
    %28 = vector.broadcast %27 : vector<1x128xf32> to vector<8x128xf32>
    %29 = arith.mulf %24, %28 : vector<8x128xf32>
    %30 = vector.broadcast %3 : vector<1x128xf32> to vector<8x128xf32>
    %31 = arith.mulf %29, %30 : vector<8x128xf32>
    %32 = vector.broadcast %4 : vector<1x128xf32> to vector<8x128xf32>
    %33 = arith.addf %31, %32 : vector<8x128xf32>
    %cst_18 = arith.constant 0.000000e+00 : f32
    %34 = vector.broadcast %cst_18 : f32 to vector<8x128xf32>
    %35 = arith.maximumf %33, %34 : vector<8x128xf32>
    %36 = arith.truncf %35 : vector<8x128xf32> to vector<8x128xbf16>
    %37 = arith.truncf %5 : vector<128x128xf32> to vector<128x128xbf16>
    %cst_19 = arith.constant dense<0.000000e+00> : vector<8x128xf32>
    %38 = tpu.matmul %36, %37, %cst_19 {dimension_numbers = #tpu.dot_dimension_numbers<[1], [0], [0], [1], [0, 0, 1, 1], [], []>} : vector<8x128xbf16>, vector<128x128xbf16>, vector<8x128xf32> -> vector<8x128xf32>
    %39 = vector.broadcast %6 : vector<1x128xf32> to vector<8x128xf32>
    %40 = arith.addf %38, %39 : vector<8x128xf32>
    %cst_20 = arith.constant dense<0xFF800000> : vector<8xf32>
    %41 = vector.multi_reduction <maximumf>, %40, %cst_20 [1] : vector<8x128xf32> to vector<8xf32>
    %42 = vector.shape_cast %41 : vector<8xf32> to vector<8x1xf32>
    %43 = vector.broadcast %42 : vector<8x1xf32> to vector<8x128xf32>
    %44 = arith.subf %40, %43 : vector<8x128xf32>
    %45 = math.exp %44 : vector<8x128xf32>
    %cst_21 = arith.constant dense<0.000000e+00> : vector<8xf32>
    %46 = vector.multi_reduction <add>, %45, %cst_21 [1] : vector<8x128xf32> to vector<8xf32>
    %47 = vector.shape_cast %46 : vector<8xf32> to vector<8x1xf32>
    %48 = math.log %47 : vector<8x1xf32>
    %49 = vector.broadcast %48 : vector<8x1xf32> to vector<8x128xf32>
    %50 = arith.subf %44, %49 : vector<8x128xf32>
    %c0_22 = arith.constant 0 : index
    %c0_23 = arith.constant 0 : index
    %51 = vector.load %arg7[%c0_22, %c0_23] : memref<8x128xf32, #tpu.memory_space<vmem>>, vector<8x128xf32>
    tpu.vector_store %arg7[%c0_22, %c0_23], %50 {strides = array<i32>} : memref<8x128xf32, #tpu.memory_space<vmem>>, vector<8x128xf32>,
    return
  }
}

</mosaic_0001>

<bundles_post_ra>
// kernel: tpu_custom_call.1
= control target key start
LH: loop header
LB: loop body
LE: loop exit
PB: predicated region body
PF: predicated region fallthrough
CT: control target
= control target key end

     0   :  { %12 = vsyncpa [#allocation3], 0  ;;  %s529_s0 = inlined_call_operand.hbm [shape: f32[8,128], index: 0, kind: input, shape index: {}]   ;;  %s530_s1 = inlined_call_operand.hbm [shape: f32[128,128], index: 1, kind: input, shape index: {}]   ;;  %s531_s2 = inlined_call_operand.vmem [shape: f32[1,128], index: 2, kind: input, shape index: {}]   ;;  %s532_s3 = inlined_call_operand.vmem [shape: f32[1,128], index: 3, kind: input, shape index: {}]   ;;  %s533_s4 = inlined_call_operand.vmem [shape: f32[1,128], index: 4, kind: input, shape index: {}]   ;;  %s534_s5 = inlined_call_operand.hbm [shape: f32[128,128], index: 5, kind: input, shape index: {}]   ;;  %s535_s6 = inlined_call_operand.vmem [shape: f32[1,128], index: 6, kind: input, shape index: {}]   ;;  %s536_s7 = inlined_call_operand.hbm [shape: f32[8,128], index: 7, kind: output, shape index: {}]  }
   0x1   :  { %13 = vsyncpa [#allocation6], 0 }
   0x2   :  { %14 = vsyncpa [#allocation4], 0  ;;  %s439_s24 = smov [#allocation5]  }
   0x3   :  { %s30_s25 = sshll.u32 %s439_s24, 4  ;;  %s31_s25 = int_to_ptr.vmem [resolvable:$true] %s30_s25 }
   0x4   :  { %s361_s26 = scalar_lea.vmem %s31_s25, 2048  ;;  %p366_p1 = scmp.lt.s32.totalorder %s31_s25, %s31_s25 }
   0x5   :  { %p362_p0 = scmp.ne.s32.totalorder %s31_s25, %s361_s26  ;;  %p367_p2 = scmp.lt.s32.totalorder %s361_s26, %s361_s26 }
   0x7   :  { %p368_p3 = por %p367_p2, %p366_p1 }
   0x9   :  { %p369_p4 = pnand %p368_p3, %p362_p0 }
   0xb   :  { %372 = shalt.err (!%p369_p4)
}
   0xc   :  { %s440_s27 = smov 128   ;;  %s441_s28 = smov 8  }
   0xd   :  { %36 = dma.hbm_to_vmem [thread:$0]  %s530_s1, 2048, %s31_s25, [#allocation6], %s440_s27, %s440_s27, %s441_s28  }
   0xe   :  { %s442_s8 = smov [#allocation2]   ;;  %s443_s10 = smov [#allocation7]  }
   0xf   :  { %s21_s9 = sshll.u32 %s442_s8, 4  ;;  %s48_s11 = sshll.u32 %s443_s10, 4  ;;  %s22_s9 = int_to_ptr.vmem [resolvable:$true] %s21_s9  ;;  %s49_s11 = int_to_ptr.vmem [resolvable:$true] %s48_s11 }
  0x10   :  { %s381_s12 = scalar_lea.vmem %s22_s9, 128  ;;  %p386_p6 = scmp.lt.s32.totalorder %s22_s9, %s22_s9 }
  0x11   :  { %p382_p5 = scmp.ne.s32.totalorder %s22_s9, %s381_s12  ;;  %p387_p7 = scmp.lt.s32.totalorder %s381_s12, %s381_s12 }
  0x13   :  { %p388_p8 = por %p387_p7, %p386_p6 }
  0x15   :  { %p389_p9 = pnand %p388_p8, %p382_p5 }
  0x17   :  { %392 = shalt.err (!%p389_p9)
}
  0x18   :  { %24 = dma.hbm_to_vmem [thread:$0]  %s529_s0, 128, %s22_s9, [#allocation3]  }
  0x19   :  { %s401_s15 = scalar_lea.vmem %s49_s11, 2048  ;;  %p406_p11 = scmp.lt.s32.totalorder %s49_s11, %s49_s11 }
  0x1a   :  { %p402_p10 = scmp.ne.s32.totalorder %s49_s11, %s401_s15  ;;  %p407_p12 = scmp.lt.s32.totalorder %s401_s15, %s401_s15 }
  0x1c   :  { %p408_p13 = por %p407_p12, %p406_p11 }
  0x1e   :  { %p409_p0 = pnand %p408_p13, %p402_p10 }
  0x20   :  { %412 = shalt.err (!%p409_p0)
}
  0x21   :  { %54 = dma.hbm_to_vmem [thread:$0]  %s534_s5, 2048, %s49_s11, [#allocation6], %s440_s27, %s440_s27, %s441_s28  }
  0x22   :  { %433 = dma.done.wait [#allocation3], 128  }
  0x23   :  { %434 = vsyncadd [#allocation3], 4294967168 }
  0x24   :  { %435 = dma.done.wait [#allocation6], 4096  }
  0x25   :  { %436 = vsyncadd [#allocation6], 4294963200  ;;  %v444_v0 = vmov 0.0   ;;  %vm445_vm0 = vmmov 0   ;;  %v82_v1 = vld [vmem:[#allocation5 + $0x70] sm:$0xff]  ;;  %v83_v2 = vld [vmem:[#allocation5 + $0x78] sm:$0xff] }
  0x26   :  { %299 = vmatprep.subr.bf16.mxu0 %v444_v0  ;;  %315 = vmatprep.mubr.msk.bf16.mxu0 %vm445_vm0, %v444_v0  ;;  %v80_v3 = vld [vmem:[#allocation5 + $0x60] sm:$0xff]  ;;  %v112_v4 = vpack.c.bf16 %v83_v2, %v82_v1  ;;  %v81_v5 = vld [vmem:[#allocation5 + $0x68] sm:$0xff]  ;;  %v78_v7 = vld [vmem:[#allocation5 + $0x50] sm:$0xff] }
  0x27   :  { %319 = vmatprep.subr.bf16.mxu1 %v444_v0  ;;  %335 = vmatprep.mubr.msk.bf16.mxu1 %vm445_vm0, %v444_v0  ;;  %v111_v6 = vpack.c.bf16 %v81_v5, %v80_v3  ;;  %v79_v8 = vld [vmem:[#allocation5 + $0x58] sm:$0xff]  ;;  %v76_v10 = vld [vmem:[#allocation5 + $0x40] sm:$0xff]  ;;  %v77_v11 = vld [vmem:[#allocation5 + $0x48] sm:$0xff] }
  0x28   :  { %300 = vmatpush3.bf16.msra.mxu0 %v112_v4  ;;  %v110_v9 = vpack.c.bf16 %v79_v8, %v78_v7  ;;  %v109_v12 = vpack.c.bf16 %v77_v11, %v76_v10  ;;  %v74_v13 = vld [vmem:[#allocation5 + $0x30] sm:$0xff]  ;;  %v75_v14 = vld [vmem:[#allocation5 + $0x38] sm:$0xff]  ;;  %v72_v16 = vld [vmem:[#allocation5 + $0x20] sm:$0xff] }
  0x29   :  { %301 = vmatprep.subr.bf16.mxu0 %v444_v0  ;;  %v108_v15 = vpack.c.bf16 %v75_v14, %v74_v13  ;;  %v73_v17 = vld [vmem:[#allocation5 + $0x28] sm:$0xff]  ;;  %v70_v19 = vld [vmem:[#allocation5 + $0x10] sm:$0xff]  ;;  %v71_v20 = vld [vmem:[#allocation5 + $0x18] sm:$0xff] }
  0x2a   :  { %v107_v18 = vpack.c.bf16 %v73_v17, %v72_v16  ;;  %v106_v21 = vpack.c.bf16 %v71_v20, %v70_v19  ;;  %v68_v22 = vld [vmem:[#allocation5] sm:$0xff]  ;;  %v69_v23 = vld [vmem:[#allocation5 + $0x8] sm:$0xff]  ;;  %v67_v25 = vld [vmem:[#allocation2] sm:$0xff] }
  0x2b   :  { %v105_v24 = vpack.c.bf16 %v69_v23, %v68_v22  ;;  %v104_v26 = vpack.c.bf16 %v67_v25, %v67_v25  ;;  %v101_v27 = vld [vmem:[#allocation7 + $0x70] sm:$0xff]  ;;  %v102_v28 = vld [vmem:[#allocation7 + $0x78] sm:$0xff]  ;;  %v99_v30 = vld [vmem:[#allocation7 + $0x60] sm:$0xff] }
  0x2c   :  { %302 = vmatpush3.bf16.msra.mxu0 %v111_v6  ;;  %v203_v29 = vpack.c.bf16 %v102_v28, %v101_v27  ;;  %v100_v31 = vld [vmem:[#allocation7 + $0x68] sm:$0xff]  ;;  %v97_v33 = vld [vmem:[#allocation7 + $0x50] sm:$0xff]  ;;  %v98_v34 = vld [vmem:[#allocation7 + $0x58] sm:$0xff] }
  0x2d   :  { %303 = vmatprep.subr.bf16.mxu0 %v444_v0  ;;  %v202_v32 = vpack.c.bf16 %v100_v31, %v99_v30  ;;  %v201_v35 = vpack.c.bf16 %v98_v34, %v97_v33  ;;  %v95_v36 = vld [vmem:[#allocation7 + $0x40] sm:$0xff]  ;;  %v96_v37 = vld [vmem:[#allocation7 + $0x48] sm:$0xff]  ;;  %v93_v39 = vld [vmem:[#allocation7 + $0x30] sm:$0xff] }
  0x2e   :  { %320 = vmatpush3.bf16.msra.mxu1 %v203_v29  ;;  %v200_v38 = vpack.c.bf16 %v96_v37, %v95_v36  ;;  %v94_v40 = vld [vmem:[#allocation7 + $0x38] sm:$0xff]  ;;  %v91_v42 = vld [vmem:[#allocation7 + $0x20] sm:$0xff]  ;;  %v92_v43 = vld [vmem:[#allocation7 + $0x28] sm:$0xff] }
  0x2f   :  { %321 = vmatprep.subr.bf16.mxu1 %v444_v0  ;;  %v199_v41 = vpack.c.bf16 %v94_v40, %v93_v39  ;;  %v198_v44 = vpack.c.bf16 %v92_v43, %v91_v42  ;;  %v89_v45 = vld [vmem:[#allocation7 + $0x10] sm:$0xff]  ;;  %v90_v46 = vld [vmem:[#allocation7 + $0x18] sm:$0xff]  ;;  %v87_v48 = vld [vmem:[#allocation7] sm:$0xff] }
  0x30   :  { %304 = vmatpush3.bf16.msra.mxu0 %v110_v9  ;;  %v197_v47 = vpack.c.bf16 %v90_v46, %v89_v45  ;;  %v88_v49 = vld [vmem:[#allocation7 + $0x8] sm:$0xff]  ;;  %v277_v51 = vld [vmem:[%s531_s2] ss:$0 sm:$0xff] }
  0x31   :  { %305 = vmatprep.subr.bf16.mxu0 %v444_v0  ;;  %v196_v50 = vpack.c.bf16 %v88_v49, %v87_v48  ;;  %v278_v13 = vld [vmem:[%s532_s3] ss:$0 sm:$0xff]  ;;  %s446_s3 = smov [#allocation8]  }
  0x32   :  { %322 = vmatpush3.bf16.msra.mxu1 %v202_v32  ;;  %v280_v20 = vld [vmem:[%s535_s6] ss:$0 sm:$0xff] }
  0x33   :  { %323 = vmatprep.subr.bf16.mxu1 %v444_v0 }
  0x34   :  { %306 = vmatpush3.bf16.msra.mxu0 %v109_v12 }
  0x35   :  { %307 = vmatprep.subr.bf16.mxu0 %v444_v0 }
  0x36   :  { %324 = vmatpush3.bf16.msra.mxu1 %v201_v35 }
  0x37   :  { %325 = vmatprep.subr.bf16.mxu1 %v444_v0 }
  0x38   :  { %308 = vmatpush3.bf16.msra.mxu0 %v108_v15  ;;  %v279_v15 = vld [vmem:[%s533_s4] ss:$0 sm:$0xff]  ;;  %s267_s4 = sshll.u32 %s446_s3, 4  ;;  %s268_s4 = int_to_ptr.vmem [resolvable:$true] %s267_s4 }
  0x39   :  { %309 = vmatprep.subr.bf16.mxu0 %v444_v0  ;;  %s413_s6 = scalar_lea.vmem %s268_s4, 128  ;;  %p418_p2 = scmp.lt.s32.totalorder %s268_s4, %s268_s4 }
  0x3a   :  { %326 = vmatpush3.bf16.msra.mxu1 %v200_v38  ;;  %p414_p1 = scmp.ne.s32.totalorder %s268_s4, %s413_s6  ;;  %p419_p3 = scmp.lt.s32.totalorder %s413_s6, %s413_s6 }
  0x3b   :  { %327 = vmatprep.subr.bf16.mxu1 %v444_v0 }
  0x3c   :  { %310 = vmatpush3.bf16.msra.mxu0 %v107_v18  ;;  %p420_p4 = por %p419_p3, %p418_p2 }
  0x3d   :  { %311 = vmatprep.subr.bf16.mxu0 %v444_v0 }
  0x3e   :  { %328 = vmatpush3.bf16.msra.mxu1 %v199_v41  ;;  %p421_p5 = pnand %p420_p4, %p414_p1 }
  0x3f   :  { %329 = vmatprep.subr.bf16.mxu1 %v444_v0 }
  0x40   :  { %312 = vmatpush3.bf16.msra.mxu0 %v106_v21 }
  0x41   :  { %313 = vmatprep.subr.bf16.mxu0 %v444_v0 }
  0x42   :  { %330 = vmatpush3.bf16.msra.mxu1 %v198_v44 }
  0x43   :  { %331 = vmatprep.subr.bf16.mxu1 %v444_v0 }
  0x44   :  { %314 = vmatpush3.bf16.msra.mxu0 %v105_v24 }
  0x46   :  { %332 = vmatpush3.bf16.msra.mxu1 %v197_v47 }
  0x47   :  { %316 = vmatmul.mubr.bf16.vlgmr.msra.gmra.mxu0 %v104_v26  ;;  %333 = vmatprep.subr.bf16.mxu1 %v444_v0 }
  0x4a   :  { %334 = vmatpush3.bf16.msra.mxu1 %v196_v50 }
 0x107   :  { %v153_v52 = vpop.f32.mrf.mxu0 }
 0x108   :  { %v154_v53 = vadd.f32 %v277_v51, %v153_v52 }
 0x109   :  { %v317_v54 = vpop.f32.mrf.mxu0 }
 0x10a   :  { %v159_v55 = vrot.slane %v154_v53, 4  ;;  %v165_v56 = vmul.f32 %v154_v53, %v154_v53 }
 0x10b   :  { %v156_v57 = vpop.f32.mrf.mxu0 }
 0x10c   :  { %v160_v58 = vadd.f32 %v159_v55, %v154_v53  ;;  %v166_v59 = vrot.slane %v165_v56, 4 }
 0x10d   :  { %v318_v60 = vpop.f32.mrf.mxu0 }
 0x10e   :  { %v161_v61 = vrot.slane %v160_v58, 2  ;;  %v167_v62 = vadd.f32 %v166_v59, %v165_v56 }
 0x110   :  { %v162_v63 = vadd.f32 %v161_v61, %v160_v58  ;;  %v168_v1 = vrot.slane %v167_v62, 2 }
 0x112   :  { %v163_v2 = vrot.slane %v162_v63, 1  ;;  %v169_v0 = vadd.f32 %v168_v1, %v167_v62 }
 0x114   :  { %v164_v3 = vadd.f32 %v163_v2, %v162_v63  ;;  %v170_v4 = vrot.slane %v169_v0, 1 }
 0x116   :  { %v171_v5 = vadd.f32 %v170_v4, %v169_v0  ;;  %v172_v6 = vmul.f32 0.125, %v164_v3 }
 0x118   :  { %v173_v7 = vmul.f32 0.125, %v171_v5  ;;  %v174_v8 = vmul.f32 %v172_v6, %v172_v6  ;;  %v176_v11 = vsub.f32 %v154_v53, %v172_v6 }
 0x11a   :  { %v175_v9 = vsub.f32 %v173_v7, %v174_v8 }
 0x11c   :  { %v177_v10 = vadd.f32 1e-05, %v175_v9 }
 0x11e   :  { %347 = vrsqrt.f32 %v177_v10 }
 0x12b   :  { %v348_v12 = vpop.eup %347 }
 0x12c   :  { %v179_v14 = vmul.f32 %v348_v12, %v176_v11 }
 0x12e   :  { %v186_v16 = vmul.f32 %v278_v13, %v179_v14 }
 0x130   :  { %v193_v17 = vadd.f32 %v279_v15, %v186_v16 }
 0x132   :  { %v194_v18 = vmax.f32 %v193_v17, 0.0 }
 0x134   :  { %v195_v19 = vpack.c.bf16 %v194_v18, %v194_v18 }
 0x136   :  { %336 = vmatmul.mubr.bf16.vlgmr.msra.gmra.mxu1 %v195_v19 }
 0x1f6   :  { %v244_v21 = vpop.f32.mrf.mxu1 }
 0x1f7   :  { %v245_v22 = vadd.f32 %v280_v20, %v244_v21 }
 0x1f8   :  { %v337_v23 = vpop.f32.mrf.mxu1 }
 0x1f9   :  { %250 = vmax.xlane.f32.xlu0 %v245_v22 }
 0x1fa   :  { %v247_v24 = vpop.f32.mrf.mxu1 }
 0x1fc   :  { %v338_v25 = vpop.f32.mrf.mxu1 }
 0x282   :  { %v251_v26 = vpop.xlane.xlu0 %250 }
 0x283   :  { %v252_v27 = vsub.f32 %v245_v22, %v251_v26 }
 0x285   :  { %v253_v28 = vmul.f32 1.442695, %v252_v27 }
 0x287   :  { %349 = vpow2.f32 %v253_v28 }
 0x294   :  { %v350_v29 = vpop.eup %349 }
 0x295   :  { %255 = vadd.xlane.f32.xlu0 %v350_v29 }
 0x31e   :  { %v256_v30 = vpop.xlane.xlu0 %255 }
 0x31f   :  { %351 = vlog2.f32 %v256_v30 }
 0x32c   :  { %v352_v31 = vpop.eup %351 }
 0x32d   :  { %v258_v32 = vmul.f32 0.6931472, %v352_v31 }
 0x32f   :  { %v259_v33 = vsub.f32 %v252_v27, %v258_v32 }
 0x331   :  { %260 = vst [vmem:[#allocation8] sm:$0xff] %v259_v33 }
 0x332   :  { %424 = shalt.err (!%p421_p5)
}
 0x333   :  { %270 = dma.vmem_to_hbm [thread:$0]  %s268_s4, 128, %s536_s7, [#allocation4]  }
 0x334   :  { %437 = dma.done.wait [#allocation4], 128  }
 0x335   :  { %438 = vsyncadd [#allocation4], 4294967168 }
 0x336   :  { %274 = vsyncpa [#allocation3], 1 }
 0x337   :  { %275 = vsyncpa [#allocation6], 1 }
 0x338   :  { %276 = vsyncpa [#allocation4], 1 }

</bundles_post_ra>
